<compile_context>
chip_gen: v7x
topology: tpu7x:2x2x1
jax: 0.10.0
libtpu: 0.0.40
codegen_flags: <defaults>
</compile_context>

<pallas_src>
import math

import jax
import jax.numpy as jnp
from jax.experimental import pallas as pl
from jax.experimental.pallas import tpu as pltpu


def _gcn_kernel(adj_ref, x_ref, w_ref, o_ref):
    """One (batch-block, row-tile) step of relu(adj @ (x @ W)).

    adj_ref : (BB, TM, N)   bf16  adjacency rows for this tile
    x_ref   : (BB * N, Fin) bf16  flattened node features (all N nodes)
    w_ref   : (Fin, Fp)     bf16  weight, out-dim zero-padded to 128*k
    o_ref   : (BB, TM, Fp)  f32
    """
    BB, TM, N = adj_ref.shape
    Fp = w_ref.shape[1]

    # 1) xw = x @ W as a single flattened matmul: M = BB*N rows feeds the MXU
    #    far better than N rows per batch element.  f32 accumulation.
    xw = jnp.dot(x_ref[...], w_ref[...], preferred_element_type=jnp.float32)
    # 2) adj @ xw, batched over the BB batch elements of this block.
    xw = xw.reshape(BB, N, Fp).astype(adj_ref.dtype)
    out = jnp.einsum(
        "btn,bnf->btf", adj_ref[...], xw, preferred_element_type=jnp.float32
    )
    # 3) ReLU + lane-dense store (Fp is a multiple of 128 -> unmasked vst).
    o_ref[...] = jnp.maximum(out, 0.0).astype(o_ref.dtype)


def gcn_forward(inputs, adjs, weight, *, block_b=None, block_rows=None):
    """relu(adjs @ inputs @ weight) — PyTorch GCN.forward (dropout p=0, no bias).

    inputs: (B, N, Fin) f32, adjs: (B, N, N) f32, weight: (Fin, Fout) f32
    returns: (B, N, Fout) f32
    """
    B, N, Fin = inputs.shape
    Fout = weight.shape[1]
    assert adjs.shape == (B, N, N)
    assert weight.shape == (Fin, Fout)
    out_dtype = inputs.dtype

    # Lane-dense output: pad weight's out-dim up to a multiple of 128.
    Fp = 128 * pl.cdiv(Fout, 128)
    w_pad = jnp.pad(weight, ((0, 0), (0, Fp - Fout)))

    # bf16 operands for the MXU (f32 accumulation happens in-kernel).
    adj_bf = adjs.astype(jnp.bfloat16)
    x_bf = inputs.reshape(B * N, Fin).astype(jnp.bfloat16)  # flattened batch
    w_bf = w_pad.astype(jnp.bfloat16)

    # Tiling: collapse the tiny problem into a single grid step; row-tile the
    # adjacency when N grows so double-buffered blocks stay inside VMEM.
    if block_b is None:
        block_b = B if B * N * N <= 512 * 512 else 1
    if block_rows is None:
        block_rows = N if N <= 512 else 512
    # TODO(synk): handle N / B not divisible by the tile sizes (pad or BoundedSlice).
    assert B % block_b == 0 and N % block_rows == 0
    grid = (B // block_b, N // block_rows)

    cost = pl.CostEstimate(
        flops=2 * B * N * Fp * (Fin + N),
        transcendentals=0,
        bytes_accessed=2 * (adj_bf.size + x_bf.size + w_bf.size) + 4 * B * N * Fp,
    )

    out_padded = pl.pallas_call(
        _gcn_kernel,
        out_shape=jax.ShapeDtypeStruct((B, N, Fp), out_dtype),
        grid_spec=pltpu.PrefetchScalarGridSpec(
            num_scalar_prefetch=0,
            grid=grid,
            in_specs=[
                # Adjacency rows for this (batch-block, row-tile).
                pl.BlockSpec((block_b, block_rows, N), lambda b, m: (b, m, 0)),
                # All node features for this batch-block, already flattened.
                pl.BlockSpec((block_b * N, Fin), lambda b, m: (b, 0)),
                # Weight: constant index map -> stays VMEM-resident.
                pl.BlockSpec((Fin, Fp), lambda b, m: (0, 0)),
            ],
            out_specs=pl.BlockSpec(
                (block_b, block_rows, Fp), lambda b, m: (b, m, 0)
            ),
        ),
        compiler_params=pltpu.CompilerParams(
            dimension_semantics=("parallel", "parallel"),
        ),
        cost_estimate=cost,
    )(adj_bf, x_bf, w_bf)

    # Drop the zero-padded output columns.
    return out_padded[:, :, :Fout]


def gcn_reference(inputs, adjs, weight):
    return jnp.maximum(jnp.einsum("bnm,bmf,fo->bno", adjs, inputs, weight), 0.0)


if __name__ == "__main__":
    # Small shapes consistent with the module's forward.
    B, N, F_IN, F_OUT = 2, 8, 16, 32

    key = jax.random.PRNGKey(0)
    k_x, k_adj, k_w = jax.random.split(key, 3)

    inputs = jax.random.normal(k_x, (B, N, F_IN), dtype=jnp.float32)

    # Symmetric non-negative "adjacency"-like matrix.
    a = jax.random.uniform(k_adj, (B, N, N), dtype=jnp.float32)
    adjs = 0.5 * (a + jnp.swapaxes(a, -1, -2))

    # reset_parameters(): uniform(-stdv, stdv), stdv = 1/sqrt(out_features)
    stdv = 1.0 / math.sqrt(F_OUT)
    weight = jax.random.uniform(
        k_w, (F_IN, F_OUT), dtype=jnp.float32, minval=-stdv, maxval=stdv
    )

    out = jax.block_until_ready(gcn_forward(inputs, adjs, weight))

    ref = gcn_reference(inputs, adjs, weight)
    assert out.shape == (B, N, F_OUT)
    # bf16 MXU operands (f32 accumulation) -> tolerance loosened vs f32 ref.
    assert jnp.allclose(out, ref, atol=3e-2, rtol=3e-2), "mismatch vs reference"

    print("KERNEL_OK")
</pallas_src>

<mosaic_0001>
module attributes {stable_mosaic.version = 11 : i64} {
  func.func @_gcn_kernel(%arg0: i32, %arg1: i32, %arg2: memref<2x8x8xbf16, #tpu.memory_space<vmem>>, %arg3: memref<16x16xbf16, #tpu.memory_space<vmem>>, %arg4: memref<16x128xbf16, #tpu.memory_space<vmem>>, %arg5: memref<2x8x128xf32, #tpu.memory_space<vmem>>) attributes {dimension_semantics = [#tpu.dimension_semantics<parallel>, #tpu.dimension_semantics<parallel>], iteration_bounds = array<i64: 1, 1>, scalar_prefetch = 0 : i64, scratch_operands = 0 : i64, tpu.core_type = #tpu.core_type<tc>, window_params = [{transform_indices = @transform_0, window_bounds = array<i64: 2, 8, 8>}, {transform_indices = @transform_1, window_bounds = array<i64: 16, 16>}, {pipeline_mode = #tpu.pipeline_mode<synchronous>, transform_indices = @transform_2, window_bounds = array<i64: 16, 128>}, {transform_indices = @transform_3, window_bounds = array<i64: 2, 8, 128>}]} {
    %c0 = arith.constant 0 : index
    %c0_0 = arith.constant 0 : index
    %0 = vector.load %arg3[%c0, %c0_0] : memref<16x16xbf16, #tpu.memory_space<vmem>>, vector<16x16xbf16>
    %c0_1 = arith.constant 0 : index
    %c0_2 = arith.constant 0 : index
    %1 = vector.load %arg4[%c0_1, %c0_2] : memref<16x128xbf16, #tpu.memory_space<vmem>>, vector<16x128xbf16>
    %cst = arith.constant dense<0.000000e+00> : vector<16x128xf32>
    %2 = tpu.matmul %0, %1, %cst {dimension_numbers = #tpu.dot_dimension_numbers<[1], [0], [0], [1], [0, 0, 1, 1], [], []>} : vector<16x16xbf16>, vector<16x128xbf16>, vector<16x128xf32> -> vector<16x128xf32>
    %3 = vector.shape_cast %2 : vector<16x128xf32> to vector<2x8x128xf32>
    %4 = arith.truncf %3 : vector<2x8x128xf32> to vector<2x8x128xbf16>
    %c0_3 = arith.constant 0 : index
    %c0_4 = arith.constant 0 : index
    %c0_5 = arith.constant 0 : index
    %5 = vector.load %arg2[%c0_3, %c0_4, %c0_5] : memref<2x8x8xbf16, #tpu.memory_space<vmem>>, vector<2x8x8xbf16>
    "tpu.trace_start"() <{level = 10 : i32, message = "btn,bnf->btf"}> : () -> ()
    %cst_6 = arith.constant dense<0.000000e+00> : vector<2x8x128xf32>
    %6 = tpu.matmul %5, %4, %cst_6 {dimension_numbers = #tpu.dot_dimension_numbers<[2], [1], [1], [2], [0, 0, 0, 1, 1, 2], [0], [0]>} : vector<2x8x8xbf16>, vector<2x8x128xbf16>, vector<2x8x128xf32> -> vector<2x8x128xf32>
    "tpu.trace_stop"() : () -> ()
    %cst_7 = arith.constant 0.000000e+00 : f32
    %7 = vector.broadcast %cst_7 : f32 to vector<2x8x128xf32>
    %8 = arith.maximumf %6, %7 : vector<2x8x128xf32>
    %c0_8 = arith.constant 0 : index
    %c0_9 = arith.constant 0 : index
    %c0_10 = arith.constant 0 : index
    %9 = vector.load %arg5[%c0_8, %c0_9, %c0_10] : memref<2x8x128xf32, #tpu.memory_space<vmem>>, vector<2x8x128xf32>
    tpu.vector_store %arg5[%c0_8, %c0_9, %c0_10], %8 {strides = array<i32>} : memref<2x8x128xf32, #tpu.memory_space<vmem>>, vector<2x8x128xf32>,
    return
  }
  func.func @transform_0(%arg0: i32, %arg1: i32) -> (i32, i32, i32) {
    %c0_i32 = arith.constant 0 : i32
    %c0_i32_0 = arith.constant 0 : i32
    return %arg0, %arg1, %c0_i32 : i32, i32, i32
  }
  func.func @transform_1(%arg0: i32, %arg1: i32) -> (i32, i32) {
    %c0_i32 = arith.constant 0 : i32
    %c0_i32_0 = arith.constant 0 : i32
    return %arg0, %c0_i32 : i32, i32
  }
  func.func @transform_2(%arg0: i32, %arg1: i32) -> (i32, i32) {
    %c0_i32 = arith.constant 0 : i32
    %c0_i32_0 = arith.constant 0 : i32
    %c0_i32_1 = arith.constant 0 : i32
    return %c0_i32, %c0_i32_0 : i32, i32
  }
  func.func @transform_3(%arg0: i32, %arg1: i32) -> (i32, i32, i32) {
    %c0_i32 = arith.constant 0 : i32
    %c0_i32_0 = arith.constant 0 : i32
    return %arg0, %arg1, %c0_i32 : i32, i32, i32
  }
}

</mosaic_0001>

<bundles_post_ra>
// kernel: tpu_custom_call.1
= control target key start
LH: loop header
LB: loop body
LE: loop exit
PB: predicated region body
PF: predicated region fallthrough
CT: control target
= control target key end

     0   :  { %8 = vsyncpa [#allocation3], 0  ;;  %s466_s0 = inlined_call_operand.hbm [shape: bf16[2,8,8], index: 0, kind: input, shape index: {}]   ;;  %s467_s1 = inlined_call_operand.hbm [shape: bf16[16,16], index: 1, kind: input, shape index: {}]   ;;  %s468_s2 = inlined_call_operand.hbm [shape: bf16[16,128], index: 2, kind: input, shape index: {}]   ;;  %s469_s3 = inlined_call_operand.hbm [shape: f32[2,8,128], index: 3, kind: output, shape index: {}]  }
   0x1   :  { %9 = vsyncpa [#allocation6], 0 }
   0x2   :  { %10 = vsyncpa [#allocation4], 0  ;;  %s372_s12 = smov [#allocation5]   ;;  %s373_s14 = smov [#allocation2]  }
   0x3   :  { %s28_s13 = sshll.u32 %s372_s12, 4  ;;  %s16_s15 = sshll.u32 %s373_s14, 4  ;;  %s29_s13 = int_to_ptr.vmem [resolvable:$true] %s28_s13  ;;  %s402_s15 = int_to_ptr.vmem [resolvable:$true] %s16_s15 }
   0x4   :  { %s278_s18 = scalar_lea.hbm %s467_s1, 128 }
   0x5   :  { %p279_p0 = scmp.ne.s32.totalorder %s467_s1, %s278_s18  ;;  %p282_p1 = scmp.lt.u32.totalorder %s278_s18, %s467_s1 }
   0x7   :  { %p284_p2 = pnand %p282_p1, %p279_p0 }
   0x9   :  { %287 = shalt.err (!%p284_p2)
}
   0xa   :  { %s288_s23 = scalar_lea.vmem %s29_s13, 128  ;;  %p293_p4 = scmp.lt.s32.totalorder %s29_s13, %s29_s13 }
   0xb   :  { %p289_p3 = scmp.ne.s32.totalorder %s29_s13, %s288_s23  ;;  %p294_p5 = scmp.lt.s32.totalorder %s288_s23, %s288_s23 }
   0xd   :  { %p295_p6 = por %p294_p5, %p293_p4 }
   0xf   :  { %p296_p7 = pnand %p295_p6, %p289_p3 }
  0x11   :  { %299 = shalt.err (!%p296_p7)
}
  0x12   :  { %s374_s24 = smov 64   ;;  %s375_s25 = smov 4  }
  0x13   :  { %34 = dma.hbm_to_vmem [thread:$0]  %s467_s1, 128, %s29_s13, [#allocation6], %s374_s24, %s374_s24, %s375_s25  }
  0x14   :  { %s300_s30 = scalar_lea.hbm %s466_s0, 128 }
  0x15   :  { %p301_p8 = scmp.ne.s32.totalorder %s466_s0, %s300_s30  ;;  %p304_p9 = scmp.lt.u32.totalorder %s300_s30, %s466_s0 }
  0x17   :  { %p306_p10 = pnand %p304_p9, %p301_p8 }
  0x19   :  { %309 = shalt.err (!%p306_p10)
}
  0x1a   :  { %s310_s8 = scalar_lea.vmem %s402_s15, 128  ;;  %p315_p12 = scmp.lt.s32.totalorder %s402_s15, %s402_s15 }
  0x1b   :  { %p311_p11 = scmp.ne.s32.totalorder %s402_s15, %s310_s8  ;;  %p316_p13 = scmp.lt.s32.totalorder %s310_s8, %s310_s8 }
  0x1d   :  { %p317_p0 = por %p316_p13, %p315_p12 }
  0x1f   :  { %p318_p1 = pnand %p317_p0, %p311_p11 }
  0x21   :  { %321 = shalt.err (!%p318_p1)
}
  0x22   :  { %22 = dma.hbm_to_vmem [thread:$0]  %s466_s0, 128, %s402_s15, [#allocation3], %s374_s24, %s374_s24, %s375_s25  }
  0x23   :  { %s376_s10 = smov [#allocation7]   ;;  %s322_s14 = scalar_lea.hbm %s468_s2, 128 }
  0x24   :  { %s40_s11 = sshll.u32 %s376_s10, 4  ;;  %p323_p2 = scmp.ne.s32.totalorder %s468_s2, %s322_s14  ;;  %s41_s11 = int_to_ptr.vmem [resolvable:$true] %s40_s11 }
  0x25   :  { %p326_p3 = scmp.lt.u32.totalorder %s322_s14, %s468_s2 }
  0x27   :  { %p328_p4 = pnand %p326_p3, %p323_p2 }
  0x29   :  { %331 = shalt.err (!%p328_p4)
}
  0x2a   :  { %s332_s20 = scalar_lea.vmem %s41_s11, 128  ;;  %p337_p6 = scmp.lt.s32.totalorder %s41_s11, %s41_s11 }
  0x2b   :  { %p333_p5 = scmp.ne.s32.totalorder %s41_s11, %s332_s20  ;;  %p338_p7 = scmp.lt.s32.totalorder %s332_s20, %s332_s20 }
  0x2d   :  { %p339_p8 = por %p338_p7, %p337_p6 }
  0x2f   :  { %p340_p9 = pnand %p339_p8, %p333_p5 }
  0x31   :  { %343 = shalt.err (!%p340_p9)
}
  0x32   :  { %46 = dma.hbm_to_vmem [thread:$0]  %s468_s2, 128, %s41_s11, [#allocation6], %s374_s24, %s374_s24, %s375_s25  }
  0x33   :  { %366 = dma.done.wait [#allocation3], 128  }
  0x34   :  { %367 = vsyncadd [#allocation3], 4294967168 }
  0x35   :  { %368 = dma.done.wait [#allocation6], 256  }
  0x36   :  { %369 = vsyncadd [#allocation6], 4294967040  ;;  %v377_v0 = vmov 0.0   ;;  %vm378_vm0 = vmmov 0   ;;  %v276_v1 = vld [vmem:[#allocation7] sm:$0xff]   ;;  %v277_v2 = vld [vmem:[#allocation5] sm:$0xff]  }
  0x37   :  { %248 = vmatprep.subr.bf16.mxu0 %v377_v0  ;;  %250 = vmatprep.mubr.msk.bf16.mxu0 %vm378_vm0, %v377_v0  ;;  %vm72_vm1 = vcmask 130048   ;;  %vm125_vm2 = vcmask 1043456   ;;  %v119_v10 = vld [vmem:[#allocation2] sm:$0xf]  ;;  %vm121_vm3 = vcmask 64512   ;;  %s379_s2 = smov [#allocation8]  }
  0x38   :  { %254 = vmatprep.subr.bf16.mxu1 %v377_v0  ;;  %256 = vmatprep.mubr.msk.bf16.mxu1 %vm378_vm0, %v377_v0  ;;  %v120_v12 = vld [vmem:[#allocation2 + $0x4] sm:$0xf]  ;;  %s224_s21 = sshll.u32 %s379_s2, 4  ;;  %s225_s21 = int_to_ptr.vmem [resolvable:$true] %s224_s21 }
  0x39   :  { %249 = vmatpush3.bf16.msra.mxu0 %v276_v1  ;;  %s344_s22 = scalar_lea.vmem %s225_s21, 256  ;;  %p349_p11 = scmp.lt.s32.totalorder %s225_s21, %s225_s21 }
  0x3a   :  { %260 = vmatprep.subr.bf16.mxu0 %v377_v0  ;;  %p345_p10 = scmp.ne.s32.totalorder %s225_s21, %s344_s22  ;;  %p350_p12 = scmp.lt.s32.totalorder %s344_s22, %s344_s22 }
  0x3c   :  { %251 = vmatmul.mubr.msk.bf16.vlgmr.msra.gmra.mrb[0].mxu0 %vm72_vm1, %v277_v2  ;;  %p351_p13 = por %p350_p12, %p349_p11 }
  0x3d   :  { %262 = vmatprep.mubr.msk.bf16.mxu0 %vm378_vm0, %v377_v0 }
  0x3e   :  { %p352_p0 = pnand %p351_p13, %p345_p10 }
 0x10f   :  { %v110_v3 = vpop.f32.mrb[0].mxu0 }
 0x110   :  { %v117_v4 = vpack.c.bf16 %v110_v3, %v110_v3  ;;  %v252_v5 = vpop.f32.mrb[1].mxu0 }
 0x111   :  { %v113_v6 = vpop.f32.mrb[2].mxu0 }
 0x112   :  { %v118_v7 = vpack.c.bf16 %v113_v6, %v113_v6  ;;  %v253_v8 = vpop.f32.mrb[3].mxu0  ;;  %v127_v9 = vsel %vm125_vm2, %v117_v4, 0 }
 0x113   :  { %255 = vmatpush3.bf16.msra.mxu1 %v127_v9 }
 0x114   :  { %v173_v11 = vsel %vm125_vm2, %v118_v7, 0 }
 0x115   :  { %261 = vmatpush3.bf16.msra.mxu0 %v173_v11 }
 0x116   :  { %257 = vmatmul.mubr.msk.bf16.vlgmr.msra.gmra.mrb[0].mxu1 %vm121_vm3, %v119_v10 }
 0x118   :  { %263 = vmatmul.mubr.msk.bf16.vlgmr.msra.gmra.mrb[4].mxu0 %vm121_vm3, %v120_v12 }
 0x1e9   :  { %v163_v13 = vpop.f32.mrb[0].mxu1 }
 0x1ea   :  { %v215_v14 = vmax.f32 %v163_v13, 0.0  ;;  %v258_v15 = vpop.f32.mrb[1].mxu1 }
 0x1eb   :  { %v209_v16 = vpop.f32.mrb[4].mxu0  ;;  %v166_v17 = vpop.f32.mrb[2].mxu1 }
 0x1ec   :  { %217 = vst [vmem:[#allocation8] sm:$0xff] %v215_v14  ;;  %v216_v18 = vmax.f32 %v209_v16, 0.0  ;;  %v264_v19 = vpop.f32.mrb[5].mxu0  ;;  %v259_v20 = vpop.f32.mrb[3].mxu1 }
 0x1ed   :  { %v212_v21 = vpop.f32.mrb[6].mxu0 }
 0x1ee   :  { %218 = vst [vmem:[#allocation8 + $0x8] sm:$0xff] %v216_v18  ;;  %v265_v22 = vpop.f32.mrb[7].mxu0 }
 0x1ef   :  { %355 = shalt.err (!%p352_p0)
}
 0x1f0   :  { %s356_s25 = scalar_lea.hbm %s469_s3, 256 }
 0x1f1   :  { %p357_p1 = scmp.ne.s32.totalorder %s469_s3, %s356_s25  ;;  %p360_p2 = scmp.lt.u32.totalorder %s356_s25, %s469_s3 }
 0x1f3   :  { %p362_p3 = pnand %p360_p2, %p357_p1 }
 0x1f5   :  { %365 = shalt.err (!%p362_p3)
}
 0x1f6   :  { %s380_s30 = smov 128   ;;  %s381_s4 = smov 8  }
 0x1f7   :  { %230 = dma.vmem_to_hbm [thread:$0]  %s225_s21, 256, %s469_s3, [#allocation4], %s380_s30, %s380_s30, %s381_s4  }
 0x1f8   :  { %370 = dma.done.wait [#allocation4], 256  }
 0x1f9   :  { %371 = vsyncadd [#allocation4], 4294967040 }
 0x1fa   :  { %234 = vsyncpa [#allocation3], 1 }
 0x1fb   :  { %235 = vsyncpa [#allocation6], 1 }
 0x1fc   :  { %236 = vsyncpa [#allocation4], 1 }

</bundles_post_ra>
